<compile_context>
chip_gen: v7x
topology: tpu7x:2x2x1
jax: 0.10.0
libtpu: 0.0.40
codegen_flags: <defaults>
</compile_context>

<pallas_src>
import numpy as np
import jax
import jax.numpy as jnp
from jax.experimental import pallas as pl
from jax.experimental.pallas import tpu as pltpu


def fixed_hidden_mlp_kernel(xa_ref, w1_ref, w2_ref, pow2_ref, inv2_ref, out_ref):
    xa = xa_ref[...]                                   # (8, 128) f32, padded + "ones" column

    # Stage 1 (linear folded into rand_weight, bias & +1 via augmented row):
    #   relu(X @ (W^T R) + b R + 1)
    h = jnp.maximum(
        jnp.dot(xa, w1_ref[...], preferred_element_type=jnp.float32), 0.0)

    # Stage 2 (second application of the shared linear layer, bias via augmented row):
    #   h @ W^T + b
    y = jnp.dot(h, w2_ref[...], preferred_element_type=jnp.float32)

    # while y.abs().sum() > 1: y /= 2   -->  closed form.
    # Dividing by 2 is exact in f32, so the loop runs exactly
    #   n = min{n >= 0 : s0 * 2^-n <= 1} = #{k : 2^k < s0}   times,
    # and the surviving scale is exactly 2^-n.
    s0 = jnp.sum(jnp.abs(y))
    mask = pow2_ref[...] < s0                               # prefix mask of length n
    scale = jnp.min(jnp.where(mask, inv2_ref[...], 1.0))    # inv2[k] = 2^-(k+1) -> min = 2^-n

    # return (y / 2^n).sum() == 2^-n * y.sum()  (power-of-2 scaling is exact)
    out_ref[0, 0] = scale * jnp.sum(y)


def _fixed_hidden_mlp_impl(x, w_lin, b_lin, rand_weight):
    """x: (B, 20); w_lin: (20, 20) PyTorch (out, in); b_lin: (20,); rand_weight: (20, 20)."""
    f32 = jnp.float32
    x = x.astype(f32)
    w_lin = w_lin.astype(f32)
    b_lin = b_lin.astype(f32)
    rand_weight = rand_weight.astype(f32)

    B, D = x.shape
    DP = 128          # lane-dense feature padding
    BP = 8            # sublane-dense batch padding
    ONE = D           # column index carrying the constant 1 (feeds the bias rows)

    # Fold linear1 into the fixed rand_weight layer (static weights, done once in XLA).
    wt = w_lin.T                                # X @ wt == X @ W.T
    wcomb = wt @ rand_weight                    # (D, D)
    bcomb = b_lin @ rand_weight + 1.0           # (D,)  -- includes the "+ 1" before relu

    # Augmented, zero-padded weights:
    #   w1[:D,:D]=Wcomb, w1[ONE,:D]=bcomb, w1[ONE,ONE]=1 (keeps the ones column alive
    #   through relu so stage 2 can pick up its bias);  w2[:D,:D]=W^T, w2[ONE,:D]=b.
    w1 = (jnp.zeros((DP, DP), f32)
          .at[:D, :D].set(wcomb)
          .at[ONE, :D].set(bcomb)
          .at[ONE, ONE].set(1.0))
    w2 = (jnp.zeros((DP, DP), f32)
          .at[:D, :D].set(wt)
          .at[ONE, :D].set(b_lin))

    # Augmented, zero-padded input: real rows carry x and a 1 in the ONE column;
    # padded rows are all-zero, so they stay exactly zero through both matmuls
    # and contribute nothing to the reductions.
    xa = (jnp.zeros((BP, DP), f32)
          .at[:B, :D].set(x)
          .at[:B, ONE].set(1.0))

    # Exact power-of-two tables (built with ldexp on host -> bit-exact):
    #   pow2[k] = 2^k (k = 0..127), inv2[k] = 2^-(k+1) clamped to the normal range.
    # Valid for any s0 up to 2^126, far beyond this problem's magnitudes.
    k = np.arange(DP)
    pow2 = jnp.asarray(np.ldexp(1.0, k).astype(np.float32)).reshape(1, DP)
    inv2 = jnp.asarray(np.ldexp(1.0, -np.minimum(k + 1, 126)).astype(np.float32)).reshape(1, DP)

    out = pl.pallas_call(
        fixed_hidden_mlp_kernel,
        out_shape=jax.ShapeDtypeStruct((1, 1), jnp.float32),
        in_specs=[
            pl.BlockSpec(memory_space=pltpu.MemorySpace.VMEM),  # xa   (8, 128)
            pl.BlockSpec(memory_space=pltpu.MemorySpace.VMEM),  # w1   (128, 128)
            pl.BlockSpec(memory_space=pltpu.MemorySpace.VMEM),  # w2   (128, 128)
            pl.BlockSpec(memory_space=pltpu.MemorySpace.VMEM),  # pow2 (1, 128)
            pl.BlockSpec(memory_space=pltpu.MemorySpace.VMEM),  # inv2 (1, 128)
        ],
        out_specs=pl.BlockSpec(memory_space=pltpu.MemorySpace.SMEM),
    )(xa, w1, w2, pow2, inv2)
    return out[0, 0]


fixed_hidden_mlp = jax.jit(_fixed_hidden_mlp_impl)


def _reference(x, w_lin, b_lin, rand_weight):
    """Pure numpy f32 re-implementation of the PyTorch forward (for a sanity check)."""
    x = np.asarray(x, np.float32)
    w = np.asarray(w_lin, np.float32)
    b = np.asarray(b_lin, np.float32)
    r = np.asarray(rand_weight, np.float32)
    h = x @ w.T + b
    h = np.maximum(h @ r + 1.0, 0.0).astype(np.float32)
    y = (h @ w.T + b).astype(np.float32)
    while np.abs(y).sum() > 1.0:
        y = (y / 2.0).astype(np.float32)
    return np.float32(y.sum())


if __name__ == "__main__":
    key = jax.random.PRNGKey(0)
    k_x, k_rw, k_w, k_b = jax.random.split(key, 4)

    B, D = 2, 20
    # X = torch.rand(2, 20)
    x = jax.random.uniform(k_x, (B, D), dtype=jnp.float32)
    # self.rand_weight = torch.rand((20, 20))
    rand_weight = jax.random.uniform(k_rw, (D, D), dtype=jnp.float32)
    # nn.Linear(20, 20): weight (out, in), bias (out,), U(-1/sqrt(in), 1/sqrt(in))
    bound = 1.0 / float(np.sqrt(D))
    w_lin = jax.random.uniform(k_w, (D, D), dtype=jnp.float32, minval=-bound, maxval=bound)
    b_lin = jax.random.uniform(k_b, (D,), dtype=jnp.float32, minval=-bound, maxval=bound)

    result = fixed_hidden_mlp(x, w_lin, b_lin, rand_weight)
    jax.block_until_ready(result)

    ref = _reference(x, w_lin, b_lin, rand_weight)
    assert np.isclose(float(result), float(ref), rtol=1e-4, atol=1e-6), (float(result), float(ref))
    print("KERNEL_OK")
</pallas_src>

<mosaic_0001>
module attributes {stable_mosaic.version = 11 : i64} {
  func.func @fixed_hidden_mlp_kernel(%arg0: memref<8x128xf32, #tpu.memory_space<vmem>>, %arg1: memref<128x128xf32, #tpu.memory_space<vmem>>, %arg2: memref<128x128xf32, #tpu.memory_space<vmem>>, %arg3: memref<1x128xf32, #tpu.memory_space<vmem>>, %arg4: memref<1x128xf32, #tpu.memory_space<vmem>>, %arg5: memref<1x1xf32, #tpu.memory_space<smem>>) attributes {dimension_semantics = [], scalar_prefetch = 0 : i64, scratch_operands = 0 : i64, tpu.core_type = #tpu.core_type<tc>} {
    %c0 = arith.constant 0 : index
    %c0_0 = arith.constant 0 : index
    %0 = vector.load %arg0[%c0, %c0_0] : memref<8x128xf32, #tpu.memory_space<vmem>>, vector<8x128xf32>
    %c0_1 = arith.constant 0 : index
    %c0_2 = arith.constant 0 : index
    %1 = vector.load %arg1[%c0_1, %c0_2] : memref<128x128xf32, #tpu.memory_space<vmem>>, vector<128x128xf32>
    %cst = arith.constant dense<0.000000e+00> : vector<8x128xf32>
    %2 = tpu.matmul %0, %1, %cst {dimension_numbers = #tpu.dot_dimension_numbers<[1], [0], [0], [1], [0, 0, 1, 1], [], []>} : vector<8x128xf32>, vector<128x128xf32>, vector<8x128xf32> -> vector<8x128xf32>
    %cst_3 = arith.constant 0.000000e+00 : f32
    %3 = vector.broadcast %cst_3 : f32 to vector<8x128xf32>
    %4 = arith.maximumf %2, %3 : vector<8x128xf32>
    %c0_4 = arith.constant 0 : index
    %c0_5 = arith.constant 0 : index
    %5 = vector.load %arg2[%c0_4, %c0_5] : memref<128x128xf32, #tpu.memory_space<vmem>>, vector<128x128xf32>
    %cst_6 = arith.constant dense<0.000000e+00> : vector<8x128xf32>
    %6 = tpu.matmul %4, %5, %cst_6 {dimension_numbers = #tpu.dot_dimension_numbers<[1], [0], [0], [1], [0, 0, 1, 1], [], []>} : vector<8x128xf32>, vector<128x128xf32>, vector<8x128xf32> -> vector<8x128xf32>
    %7 = math.absf %6 : vector<8x128xf32>
    %8 = vector.shape_cast %7 : vector<8x128xf32> to vector<1x8x128xf32>
    %cst_7 = arith.constant dense<0.000000e+00> : vector<1xf32>
    %9 = vector.multi_reduction <add>, %8, %cst_7 [1, 2] : vector<1x8x128xf32> to vector<1xf32>
    %10 = vector.shape_cast %9 : vector<1xf32> to vector<1x1x1xf32>
    %11 = vector.extract %10[0, 0, 0] : f32 from vector<1x1x1xf32>
    %c0_8 = arith.constant 0 : index
    %c0_9 = arith.constant 0 : index
    %12 = vector.load %arg3[%c0_8, %c0_9] : memref<1x128xf32, #tpu.memory_space<vmem>>, vector<1x128xf32>
    %13 = vector.broadcast %11 : f32 to vector<1x128xf32>
    %14 = arith.cmpf olt, %12, %13 : vector<1x128xf32>
    %c0_10 = arith.constant 0 : index
    %c0_11 = arith.constant 0 : index
    %15 = vector.load %arg4[%c0_10, %c0_11] : memref<1x128xf32, #tpu.memory_space<vmem>>, vector<1x128xf32>
    %cst_12 = arith.constant 1.000000e+00 : f32
    %16 = vector.broadcast %cst_12 : f32 to vector<1x128xf32>
    %17 = arith.select %14, %15, %16 : vector<1x128xi1>, vector<1x128xf32>
    %18 = vector.shape_cast %17 : vector<1x128xf32> to vector<1x1x128xf32>
    %cst_13 = arith.constant dense<0x7F800000> : vector<1xf32>
    %19 = vector.multi_reduction <minimumf>, %18, %cst_13 [1, 2] : vector<1x1x128xf32> to vector<1xf32>
    %20 = vector.shape_cast %19 : vector<1xf32> to vector<1x1x1xf32>
    %21 = vector.extract %20[0, 0, 0] : f32 from vector<1x1x1xf32>
    %22 = vector.shape_cast %6 : vector<8x128xf32> to vector<1x8x128xf32>
    %cst_14 = arith.constant dense<0.000000e+00> : vector<1xf32>
    %23 = vector.multi_reduction <add>, %22, %cst_14 [1, 2] : vector<1x8x128xf32> to vector<1xf32>
    %24 = vector.shape_cast %23 : vector<1xf32> to vector<1x1x1xf32>
    %25 = vector.extract %24[0, 0, 0] : f32 from vector<1x1x1xf32>
    %26 = arith.mulf %21, %25 : f32
    %c0_15 = arith.constant 0 : index
    %c0_16 = arith.constant 0 : index
    %27 = memref.load %arg5[%c0_15, %c0_16] : memref<1x1xf32, #tpu.memory_space<smem>>
    memref.store %26, %arg5[%c0_15, %c0_16] : memref<1x1xf32, #tpu.memory_space<smem>>
    return
  }
}

</mosaic_0001>

<bundles_post_ra>
// kernel: _fixed_hidden_mlp_impl.1
= control target key start
LH: loop header
LB: loop body
LE: loop exit
PB: predicated region body
PF: predicated region fallthrough
CT: control target
= control target key end

     0   :  { %v420_v3 = vmov 0.0|0.0   ;;  %vm421_vm0 = vmmov 0   ;;  %v422_v6 = vmov 0.0   ;;  %s587_s0 = inlined_call_operand.vmem [shape: f32[8,128], index: 0, kind: input, shape index: {}]   ;;  %s588_s1 = inlined_call_operand.vmem [shape: f32[128,128], index: 1, kind: input, shape index: {}]   ;;  %s589_s2 = inlined_call_operand.vmem [shape: f32[128,128], index: 2, kind: input, shape index: {}]   ;;  %s590_s3 = inlined_call_operand.vmem [shape: f32[1,128], index: 3, kind: input, shape index: {}]   ;;  %s591_s4 = inlined_call_operand.vmem [shape: f32[1,128], index: 4, kind: input, shape index: {}]   ;;  %s592_s5 = inlined_call_operand.hbm [shape: f32[1,1], index: 5, kind: output, shape index: {}]  }
   0x1   :  { %v22_v0 = vld [vmem:[%s588_s1] sm:$0xff]  ;;  %v23_v1 = vld [vmem:[%s588_s1 + $0x8] sm:$0xff]  ;;  %v24_v2 = vld [vmem:[%s588_s1 + $0x10] sm:$0xff]  ;;  %350 = vmatprep.subr.bf16.mxu0 %v420_v3  ;;  %312 = vmatprep.mubr.msk.f32.mxu0 %vm421_vm0, %v422_v6 }
   0x2   :  { %v351_v4 = vpack.c.bf16 %v23_v1, %v22_v0  ;;  %v25_v5 = vld [vmem:[%s588_s1 + $0x18] sm:$0xff]  ;;  %374 = vmatprep.subr.bf16.mxu1 %v420_v3  ;;  %347 = vmatprep.mubr.msk.f32.mxu1 %vm421_vm0, %v422_v6  ;;  %v26_v8 = vld [vmem:[%s588_s1 + $0x20] sm:$0xff]  ;;  %v27_v9 = vld [vmem:[%s588_s1 + $0x28] sm:$0xff] }
   0x3   :  { %v354_v7 = vpack.c.bf16 %v25_v5, %v24_v2  ;;  %v109_v10 = vld [vmem:[%s589_s2] sm:$0xff]  ;;  %v110_v11 = vld [vmem:[%s589_s2 + $0x8] sm:$0xff]  ;;  %v111_v12 = vld [vmem:[%s589_s2 + $0x10] sm:$0xff]  ;;  %v357_v14 = vpack.c.bf16 %v27_v9, %v26_v8 }
   0x4   :  { %352 = vmatpush3.bf16.msra.mxu0 %v351_v4  ;;  %v112_v13 = vld [vmem:[%s589_s2 + $0x18] sm:$0xff]  ;;  %v375_v15 = vpack.c.bf16 %v110_v11, %v109_v10  ;;  %v28_v16 = vld [vmem:[%s588_s1 + $0x30] sm:$0xff]  ;;  %v113_v19 = vld [vmem:[%s589_s2 + $0x20] sm:$0xff] }
   0x5   :  { %353 = vmatprep.subr.bf16.mxu0 %v420_v3  ;;  %v29_v17 = vld [vmem:[%s588_s1 + $0x38] sm:$0xff]  ;;  %v378_v18 = vpack.c.bf16 %v112_v13, %v111_v12  ;;  %v114_v20 = vld [vmem:[%s589_s2 + $0x28] sm:$0xff] }
   0x6   :  { %376 = vmatpush3.bf16.msra.mxu1 %v375_v15 }
   0x7   :  { %377 = vmatprep.subr.bf16.mxu1 %v420_v3 }
   0x8   :  { %355 = vmatpush3.bf16.msra.mxu0 %v354_v7 }
   0x9   :  { %356 = vmatprep.subr.bf16.mxu0 %v420_v3 }
   0xa   :  { %10 = vsyncpa [#allocation3], 0  ;;  %v360_v21 = vpack.c.bf16 %v29_v17, %v28_v16  ;;  %v30_v22 = vld [vmem:[%s588_s1 + $0x40] sm:$0xff]  ;;  %v31_v23 = vld [vmem:[%s588_s1 + $0x48] sm:$0xff]  ;;  %379 = vmatpush3.bf16.msra.mxu1 %v378_v18  ;;  %v381_v24 = vpack.c.bf16 %v114_v20, %v113_v19  ;;  %vm210_vm1 = vcmask 1040384   ;;  %s408_s14 = scalar_lea.hbm %s592_s5, 16 }
   0xb   :  { %380 = vmatprep.subr.bf16.mxu1 %v420_v3  ;;  %v115_v25 = vld [vmem:[%s589_s2 + $0x30] sm:$0xff]  ;;  %v116_v26 = vld [vmem:[%s589_s2 + $0x38] sm:$0xff]  ;;  %v363_v27 = vpack.c.bf16 %v31_v23, %v30_v22  ;;  %v117_v31 = vld [vmem:[%s589_s2 + $0x40] sm:$0xff]  ;;  %p409_p0 = scmp.ne.s32.totalorder %s592_s5, %s408_s14  ;;  %p412_p1 = scmp.lt.u32.totalorder %s408_s14, %s592_s5 }
   0xc   :  { %358 = vmatpush3.bf16.msra.mxu0 %v357_v14  ;;  %v32_v28 = vld [vmem:[%s588_s1 + $0x50] sm:$0xff]  ;;  %v33_v29 = vld [vmem:[%s588_s1 + $0x58] sm:$0xff]  ;;  %v384_v30 = vpack.c.bf16 %v116_v26, %v115_v25  ;;  %v118_v32 = vld [vmem:[%s589_s2 + $0x48] sm:$0xff] }
   0xd   :  { %359 = vmatprep.subr.bf16.mxu0 %v420_v3  ;;  %v366_v33 = vpack.c.bf16 %v33_v29, %v32_v28  ;;  %v34_v34 = vld [vmem:[%s588_s1 + $0x60] sm:$0xff]  ;;  %v35_v35 = vld [vmem:[%s588_s1 + $0x68] sm:$0xff]  ;;  %v387_v36 = vpack.c.bf16 %v118_v32, %v117_v31  ;;  %v119_v37 = vld [vmem:[%s589_s2 + $0x50] sm:$0xff]  ;;  %p414_p2 = pnand %p412_p1, %p409_p0 }
   0xe   :  { %382 = vmatpush3.bf16.msra.mxu1 %v381_v24  ;;  %v120_v38 = vld [vmem:[%s589_s2 + $0x58] sm:$0xff]  ;;  %v369_v39 = vpack.c.bf16 %v35_v35, %v34_v34  ;;  %v36_v40 = vld [vmem:[%s588_s1 + $0x70] sm:$0xff]  ;;  %v121_v43 = vld [vmem:[%s589_s2 + $0x60] sm:$0xff] }
   0xf   :  { %383 = vmatprep.subr.bf16.mxu1 %v420_v3  ;;  %v37_v41 = vld [vmem:[%s588_s1 + $0x78] sm:$0xff]  ;;  %v390_v42 = vpack.c.bf16 %v120_v38, %v119_v37  ;;  %v122_v44 = vld [vmem:[%s589_s2 + $0x68] sm:$0xff]  ;;  %v21_v47 = vld [vmem:[%s587_s0] sm:$0xff] }
  0x10   :  { %361 = vmatpush3.bf16.msra.mxu0 %v360_v21  ;;  %v372_v45 = vpack.c.bf16 %v37_v41, %v36_v40  ;;  %v393_v46 = vpack.c.bf16 %v122_v44, %v121_v43  ;;  %v123_v48 = vld [vmem:[%s589_s2 + $0x70] sm:$0xff]  ;;  %v124_v49 = vld [vmem:[%s589_s2 + $0x78] sm:$0xff]  ;;  %v205_v0 = vld [vmem:[%s590_s3] sm:$0x1] }
  0x11   :  { %362 = vmatprep.subr.bf16.mxu0 %v420_v3  ;;  %v396_v50 = vpack.c.bf16 %v124_v49, %v123_v48  ;;  %v208_v1 = vld [vmem:[%s591_s4] sm:$0x1] }
  0x12   :  { %385 = vmatpush3.bf16.msra.mxu1 %v384_v30 }
  0x13   :  { %386 = vmatprep.subr.bf16.mxu1 %v420_v3 }
  0x14   :  { %364 = vmatpush3.bf16.msra.mxu0 %v363_v27 }
  0x15   :  { %365 = vmatprep.subr.bf16.mxu0 %v420_v3 }
  0x16   :  { %388 = vmatpush3.bf16.msra.mxu1 %v387_v36 }
  0x17   :  { %389 = vmatprep.subr.bf16.mxu1 %v420_v3 }
  0x18   :  { %367 = vmatpush3.bf16.msra.mxu0 %v366_v33 }
  0x19   :  { %368 = vmatprep.subr.bf16.mxu0 %v420_v3 }
  0x1a   :  { %391 = vmatpush3.bf16.msra.mxu1 %v390_v42 }
  0x1b   :  { %392 = vmatprep.subr.bf16.mxu1 %v420_v3 }
  0x1c   :  { %370 = vmatpush3.bf16.msra.mxu0 %v369_v39 }
  0x1d   :  { %371 = vmatprep.subr.bf16.mxu0 %v420_v3 }
  0x1e   :  { %394 = vmatpush3.bf16.msra.mxu1 %v393_v46 }
  0x1f   :  { %395 = vmatprep.subr.bf16.mxu1 %v420_v3 }
  0x20   :  { %373 = vmatpush3.bf16.msra.mxu0 %v372_v45 }
  0x22   :  { %397 = vmatpush3.bf16.msra.mxu1 %v396_v50 }
  0x23   :  { %313 = vmatmul.mubr.f32.vlgmr.msra.gmra.mrb[0].mxu0 %v21_v47 }
  0xf6   :  { %v104_v51 = vpop.f32.mrb[0].mxu0 }
  0xf7   :  { %v108_v52 = vmax.f32 %v104_v51, 0.0  ;;  %v314_v53 = vpop.f32.mrb[1].mxu0 }
  0xf9   :  { %348 = vmatmul.mubr.f32.vlgmr.msra.gmra.mrb[0].mxu1 %v108_v52 }
 0x1cc   :  { %v191_v54 = vpop.f32.mrb[0].mxu1 }
 0x1cd   :  { %221 = vadd.xlane.f32.xlu1 %v191_v54  ;;  %v349_v55 = vpop.f32.mrb[1].mxu1  ;;  %v195_v56 = vand.u32 2147483647, %v191_v54 }
 0x1cf   :  { %196 = vadd.xlane.f32.xlu0 %v195_v56 }
 0x25a   :  { %v222_v5 = vpop.xlane.xlu1 %221 }
 0x25b   :  { %v223_v6 = vrot.slane %v222_v5, 4 }
 0x25c   :  { %v197_v57 = vpop.xlane.xlu0 %196 }
 0x25d   :  { %v198_v58 = vrot.slane %v197_v57, 4  ;;  %v224_v7 = vadd.f32 %v223_v6, %v222_v5 }
 0x25f   :  { %v199_v59 = vadd.f32 %v198_v58, %v197_v57  ;;  %v225_v8 = vrot.slane %v224_v7, 2 }
 0x261   :  { %v200_v60 = vrot.slane %v199_v59, 2  ;;  %v226_v12 = vadd.f32 %v225_v8, %v224_v7 }
 0x263   :  { %v201_v61 = vadd.f32 %v200_v60, %v199_v59  ;;  %v227_v15 = vrot.slane %v226_v12, 1 }
 0x265   :  { %v202_v62 = vrot.slane %v201_v61, 1  ;;  %v228_v18 = vadd.f32 %v227_v15, %v226_v12 }
 0x267   :  { %v203_v63 = vadd.f32 %v202_v62, %v201_v61 }
 0x269   :  { %398 = vpush %v203_v63 }
 0x29a   :  { %s399_s8 = spop %398 }
 0x29b   :  { %v206_v2 = vstv %s399_s8 }
 0x29c   :  { %vm207_vm2 = vcmp.lt.f32.partialorder %v205_v0, %v206_v2 }
 0x29d   :  { %v209_v3 = vsel %vm207_vm2, %v208_v1, 1.0 }
 0x29e   :  { %v211_v4 = vsel %vm210_vm1, %v209_v3, inf }
 0x29f   :  { %212 = vmin.xlane.f32.xlu0 %v211_v4 }
 0x32c   :  { %v213_v9 = vpop.xlane.xlu0 %212 }
 0x32d   :  { %v214_v10 = vrot.slane %v213_v9, 4 }
 0x32f   :  { %v215_v11 = vmin.f32 %v213_v9, %v214_v10 }
 0x331   :  { %v216_v13 = vrot.slane %v215_v11, 2 }
 0x333   :  { %v217_v14 = vmin.f32 %v215_v11, %v216_v13 }
 0x335   :  { %v218_v16 = vrot.slane %v217_v14, 1 }
 0x337   :  { %v219_v17 = vmin.f32 %v217_v14, %v218_v16 }
 0x339   :  { %400 = vpush %v219_v17 }
 0x33a   :  { %402 = vpush %v228_v18 }
 0x36a   :  { %s401_s3 = spop %400 }
 0x36b   :  { %s403_s4 = spop %402 }
 0x36c   :  { %s230_s11 = smul.f32 %s403_s4, %s401_s3 }
 0x36e   :  { %232 = sst [smem:[#allocation2]] %s230_s11 }
 0x36f   :  { %417 = shalt.err (!%p414_p2)
}
 0x370   :  { %s423_s19 = smov [#allocation2]  }
 0x371   :  { %240 = dma.smem_to_hbm %s423_s19, 16, %s592_s5, [#allocation3]  }
 0x372   :  { %418 = dma.done.wait [#allocation3], 16  }
 0x373   :  { %419 = vsyncadd [#allocation3], 4294967280 }
 0x374   :  { %244 = sfence }
 0x375   :  { %245 = vsyncpa [#allocation3], 1 }

</bundles_post_ra>
